<compile_context>
chip_gen: v5e
topology: v5e:2x2
jax: 0.10.0
libtpu: 0.0.40
codegen_flags: <defaults>
</compile_context>

<pallas_src>
import jax
import jax.numpy as jnp
from jax.experimental import pallas as pl
from jax.experimental.pallas import tpu as pltpu

LANES = 128
ACC_SUBLANES = 32          # (32,128) f32 accumulator = 4 vregs per quantity
MAX_ROW_TILE = 4096        # (4096,128) f32 = 2 MiB per input block


def _round_up(x, m):
    return ((x + m - 1) // m) * m


def _iou_kernel(pred_ref, target_ref, inter_ref, sum_ref):
    # Grid: (chunk "parallel", tile "arbitrary"); the output blocks are
    # resident across the tile axis and act as accumulators.
    @pl.when(pl.program_id(1) == 0)
    def _():
        inter_ref[...] = jnp.zeros_like(inter_ref)
        sum_ref[...] = jnp.zeros_like(sum_ref)

    x = pred_ref[...].astype(jnp.float32)
    t = target_ref[...].astype(jnp.float32)

    # sigmoid(x) = 0.5*(tanh(0.5*x)+1): tanh runs on the EUP slot, the
    # mul/add are plain VPU ops — no f32 divide on the VALU slot.
    p = 0.5 * (jnp.tanh(0.5 * x) + 1.0)

    # Fold the (row_tile, 128) block into a (32, 128) vreg-shaped partial.
    # The reshape only splits the sublane axis, so it is layout-preserving.
    inter_ref[...] += jnp.sum((p * t).reshape(-1, ACC_SUBLANES, LANES),
                              axis=0, keepdims=True)
    sum_ref[...] += jnp.sum((p + t).reshape(-1, ACC_SUBLANES, LANES),
                            axis=0, keepdims=True)


def iou(pred, target, smooth=1.0):
    """Pallas equivalent of the PyTorch IoU.forward (returns a scalar f32)."""
    assert pred.shape == target.shape
    n = int(pred.size)
    assert n > 0

    pred_flat = pred.reshape(-1)
    target_flat = target.reshape(-1)

    # Tiling: lane-dense (rows, 128) slab, row tiles a multiple of 32
    # sublanes (layout-native for f32 / bf16 / int8 inputs).
    rows_needed = -(-n // LANES)                          # ceil(n / 128)
    row_tile = min(MAX_ROW_TILE, _round_up(rows_needed, ACC_SUBLANES))
    num_tiles = -(-rows_needed // row_tile)

    # 2-way chunk split only when it is exact (no phantom tiles, no mask).
    # It maps the grid onto both TensorCores on v7x and is harmless on
    # single-TC chips.
    num_chunks = 2 if (num_tiles >= 2 and num_tiles % 2 == 0) else 1
    tiles_per_chunk = num_tiles // num_chunks

    total_rows = num_tiles * row_tile
    total = total_rows * LANES
    pad = total - n
    if pad:
        # Zero pad: sigmoid(0) = 0.5, target pad = 0 -> corrected analytically
        # below; no in-kernel masking needed.
        pred_flat = jnp.pad(pred_flat, (0, pad))
        target_flat = jnp.pad(target_flat, (0, pad))

    pred2d = pred_flat.reshape(total_rows, LANES)
    target2d = target_flat.reshape(total_rows, LANES)

    def in_map(c, i):
        return (c * tiles_per_chunk + i, 0)

    partial_shape = jax.ShapeDtypeStruct((num_chunks, ACC_SUBLANES, LANES),
                                         jnp.float32)

    inter_p, sum_p = pl.pallas_call(
        _iou_kernel,
        out_shape=(partial_shape, partial_shape),
        grid_spec=pltpu.PrefetchScalarGridSpec(
            num_scalar_prefetch=0,
            grid=(num_chunks, tiles_per_chunk),
            in_specs=[
                pl.BlockSpec((row_tile, LANES), in_map),
                pl.BlockSpec((row_tile, LANES), in_map),
            ],
            out_specs=(
                pl.BlockSpec((1, ACC_SUBLANES, LANES), lambda c, i: (c, 0, 0)),
                pl.BlockSpec((1, ACC_SUBLANES, LANES), lambda c, i: (c, 0, 0)),
            ),
        ),
        compiler_params=pltpu.CompilerParams(
            dimension_semantics=("parallel", "arbitrary")),
    )(pred2d, target2d)

    # Tiny final combine of the per-chunk vreg partials + analytic pad fix.
    intersection = jnp.sum(inter_p)
    total_sum = jnp.sum(sum_p) - jnp.float32(0.5 * pad)
    union = total_sum - intersection
    smooth = jnp.float32(smooth)
    return (intersection + smooth) / (union + smooth)


def iou_ref(pred, target, smooth=1.0):
    p = jax.nn.sigmoid(pred.astype(jnp.float32)).reshape(-1)
    t = target.astype(jnp.float32).reshape(-1)
    inter = jnp.sum(p * t)
    union = jnp.sum(p) + jnp.sum(t) - inter
    return (inter + smooth) / (union + smooth)


if __name__ == "__main__":
    key = jax.random.PRNGKey(0)
    k1, k2 = jax.random.split(key)
    # Segmentation-style logit / mask pair: N=2, C=4, H=W=16
    pred = jax.random.normal(k1, (2, 4, 16, 16), dtype=jnp.float32)
    target = (jax.random.uniform(k2, (2, 4, 16, 16)) > 0.5).astype(jnp.float32)

    result = jax.block_until_ready(iou(pred, target, smooth=1.0))
    expected = jax.block_until_ready(iou_ref(pred, target, smooth=1.0))
    assert jnp.allclose(result, expected, rtol=1e-5, atol=1e-5), (result, expected)
    print("KERNEL_OK")
</pallas_src>

<mosaic_0001>
module attributes {stable_mosaic.version = 11 : i64} {
  func.func @_iou_kernel(%arg0: i32, %arg1: i32, %arg2: memref<32x128xf32, #tpu.memory_space<vmem>>, %arg3: memref<32x128xf32, #tpu.memory_space<vmem>>, %arg4: memref<1x32x128xf32, #tpu.memory_space<vmem>>, %arg5: memref<1x32x128xf32, #tpu.memory_space<vmem>>) attributes {dimension_semantics = [#tpu.dimension_semantics<parallel>, #tpu.dimension_semantics<arbitrary>], iteration_bounds = array<i64: 1, 1>, scalar_prefetch = 0 : i64, scratch_operands = 0 : i64, tpu.core_type = #tpu.core_type<tc>, window_params = [{transform_indices = @transform_0, window_bounds = array<i64: 32, 128>}, {transform_indices = @transform_1, window_bounds = array<i64: 32, 128>}, {transform_indices = @transform_2, window_bounds = array<i64: 1, 32, 128>}, {transform_indices = @transform_3, window_bounds = array<i64: 1, 32, 128>}]} {
    %c0_i32 = arith.constant 0 : i32
    %0 = arith.cmpi eq, %arg1, %c0_i32 : i32
    %1 = arith.extui %0 : i1 to i32
    %c0_i32_0 = arith.constant 0 : i32
    %2 = arith.cmpi ne, %1, %c0_i32_0 : i32
    scf.if %2 {
      %cst_20 = arith.constant 0.000000e+00 : f32
      %26 = vector.broadcast %cst_20 : f32 to vector<1x32x128xf32>
      %c0_21 = arith.constant 0 : index
      %c0_22 = arith.constant 0 : index
      %c0_23 = arith.constant 0 : index
      %27 = vector.load %arg4[%c0_21, %c0_22, %c0_23] : memref<1x32x128xf32, #tpu.memory_space<vmem>>, vector<1x32x128xf32>
      tpu.vector_store %arg4[%c0_21, %c0_22, %c0_23], %26 {strides = array<i32>} : memref<1x32x128xf32, #tpu.memory_space<vmem>>, vector<1x32x128xf32>,
      %cst_24 = arith.constant 0.000000e+00 : f32
      %28 = vector.broadcast %cst_24 : f32 to vector<1x32x128xf32>
      %c0_25 = arith.constant 0 : index
      %c0_26 = arith.constant 0 : index
      %c0_27 = arith.constant 0 : index
      %29 = vector.load %arg5[%c0_25, %c0_26, %c0_27] : memref<1x32x128xf32, #tpu.memory_space<vmem>>, vector<1x32x128xf32>
      tpu.vector_store %arg5[%c0_25, %c0_26, %c0_27], %28 {strides = array<i32>} : memref<1x32x128xf32, #tpu.memory_space<vmem>>, vector<1x32x128xf32>,
    } else {
    }
    %c0 = arith.constant 0 : index
    %c0_1 = arith.constant 0 : index
    %3 = vector.load %arg2[%c0, %c0_1] : memref<32x128xf32, #tpu.memory_space<vmem>>, vector<32x128xf32>
    %c0_2 = arith.constant 0 : index
    %c0_3 = arith.constant 0 : index
    %4 = vector.load %arg3[%c0_2, %c0_3] : memref<32x128xf32, #tpu.memory_space<vmem>>, vector<32x128xf32>
    %cst = arith.constant 5.000000e-01 : f32
    %5 = vector.broadcast %cst : f32 to vector<32x128xf32>
    %6 = arith.mulf %5, %3 : vector<32x128xf32>
    %7 = math.tanh %6 : vector<32x128xf32>
    %cst_4 = arith.constant 1.000000e+00 : f32
    %8 = vector.broadcast %cst_4 : f32 to vector<32x128xf32>
    %9 = arith.addf %7, %8 : vector<32x128xf32>
    %cst_5 = arith.constant 5.000000e-01 : f32
    %10 = vector.broadcast %cst_5 : f32 to vector<32x128xf32>
    %11 = arith.mulf %10, %9 : vector<32x128xf32>
    %c0_6 = arith.constant 0 : index
    %c0_7 = arith.constant 0 : index
    %c0_8 = arith.constant 0 : index
    %12 = vector.load %arg4[%c0_6, %c0_7, %c0_8] : memref<1x32x128xf32, #tpu.memory_space<vmem>>, vector<1x32x128xf32>
    %13 = arith.mulf %11, %4 : vector<32x128xf32>
    %14 = vector.shape_cast %13 : vector<32x128xf32> to vector<1x32x128xf32>
    %cst_9 = arith.constant dense<0.000000e+00> : vector<32x128xf32>
    %15 = vector.multi_reduction <add>, %14, %cst_9 [0] : vector<1x32x128xf32> to vector<32x128xf32>
    %16 = vector.shape_cast %15 : vector<32x128xf32> to vector<1x32x128xf32>
    %17 = arith.addf %12, %16 : vector<1x32x128xf32>
    %c0_10 = arith.constant 0 : index
    %c0_11 = arith.constant 0 : index
    %c0_12 = arith.constant 0 : index
    %18 = vector.load %arg4[%c0_10, %c0_11, %c0_12] : memref<1x32x128xf32, #tpu.memory_space<vmem>>, vector<1x32x128xf32>
    tpu.vector_store %arg4[%c0_10, %c0_11, %c0_12], %17 {strides = array<i32>} : memref<1x32x128xf32, #tpu.memory_space<vmem>>, vector<1x32x128xf32>,
    %c0_13 = arith.constant 0 : index
    %c0_14 = arith.constant 0 : index
    %c0_15 = arith.constant 0 : index
    %19 = vector.load %arg5[%c0_13, %c0_14, %c0_15] : memref<1x32x128xf32, #tpu.memory_space<vmem>>, vector<1x32x128xf32>
    %20 = arith.addf %11, %4 : vector<32x128xf32>
    %21 = vector.shape_cast %20 : vector<32x128xf32> to vector<1x32x128xf32>
    %cst_16 = arith.constant dense<0.000000e+00> : vector<32x128xf32>
    %22 = vector.multi_reduction <add>, %21, %cst_16 [0] : vector<1x32x128xf32> to vector<32x128xf32>
    %23 = vector.shape_cast %22 : vector<32x128xf32> to vector<1x32x128xf32>
    %24 = arith.addf %19, %23 : vector<1x32x128xf32>
    %c0_17 = arith.constant 0 : index
    %c0_18 = arith.constant 0 : index
    %c0_19 = arith.constant 0 : index
    %25 = vector.load %arg5[%c0_17, %c0_18, %c0_19] : memref<1x32x128xf32, #tpu.memory_space<vmem>>, vector<1x32x128xf32>
    tpu.vector_store %arg5[%c0_17, %c0_18, %c0_19], %24 {strides = array<i32>} : memref<1x32x128xf32, #tpu.memory_space<vmem>>, vector<1x32x128xf32>,
    return
  }
  func.func @transform_0(%arg0: i32, %arg1: i32) -> (i32, i32) {
    %c1_i32 = arith.constant 1 : i32
    %0 = arith.muli %arg0, %c1_i32 : i32
    %1 = arith.addi %0, %arg1 : i32
    %c0_i32 = arith.constant 0 : i32
    %c0_i32_0 = arith.constant 0 : i32
    return %1, %c0_i32 : i32, i32
  }
  func.func @transform_1(%arg0: i32, %arg1: i32) -> (i32, i32) {
    %c1_i32 = arith.constant 1 : i32
    %0 = arith.muli %arg0, %c1_i32 : i32
    %1 = arith.addi %0, %arg1 : i32
    %c0_i32 = arith.constant 0 : i32
    %c0_i32_0 = arith.constant 0 : i32
    return %1, %c0_i32 : i32, i32
  }
  func.func @transform_2(%arg0: i32, %arg1: i32) -> (i32, i32, i32) {
    %c0_i32 = arith.constant 0 : i32
    %c0_i32_0 = arith.constant 0 : i32
    %c0_i32_1 = arith.constant 0 : i32
    return %arg0, %c0_i32, %c0_i32_0 : i32, i32, i32
  }
  func.func @transform_3(%arg0: i32, %arg1: i32) -> (i32, i32, i32) {
    %c0_i32 = arith.constant 0 : i32
    %c0_i32_0 = arith.constant 0 : i32
    %c0_i32_1 = arith.constant 0 : i32
    return %arg0, %c0_i32, %c0_i32_0 : i32, i32, i32
  }
}

</mosaic_0001>

<bundles_post_ra>
// kernel: tpu_custom_call.1
= control target key start
LH: loop header
LB: loop body
LE: loop exit
PB: predicated region body
PF: predicated region fallthrough
CT: control target
= control target key end

     0   :  { %9 = vsyncpa [#allocation3], 0  ;;  %s342_s0 = inlined_call_operand.hbm [shape: f32[32,128], index: 0, kind: input, shape index: {}]   ;;  %s343_s1 = inlined_call_operand.hbm [shape: f32[32,128], index: 1, kind: input, shape index: {}]   ;;  %s344_s2 = inlined_call_operand.hbm [shape: f32[1,32,128], index: 2, kind: output, shape index: {0}]   ;;  %s345_s3 = inlined_call_operand.hbm [shape: f32[1,32,128], index: 3, kind: output, shape index: {1}]  }
   0x1   :  { %10 = vsyncpa [#allocation6], 0 }
   0x2   :  { %11 = vsyncpa [#allocation4], 0 }
   0x3   :  { %12 = vsyncpa [#allocation9], 0  ;;  %s21_s14 = sshll.u32 %s342_s0, 4  ;;  %s292_s15 = smov [#allocation2]   ;;  %s22_s14 = int_to_ptr.hbm [resolvable:$true] %s21_s14 }
   0x4   :  { %s23_s16 = sshll.u32 %s292_s15, 4  ;;  %s38_s19 = sshll.u32 %s343_s1, 4  ;;  %s24_s16 = int_to_ptr.vmem [resolvable:$true] %s23_s16  ;;  %s39_s19 = int_to_ptr.hbm [resolvable:$true] %s38_s19 }
   0x5   :  { %s293_s20 = smov 128   ;;  %s294_s21 = smov 8  }
   0x6   :  { %29 = dma.hbm_to_vmem [thread:$0]  %s22_s14, 512, %s24_s16, [#allocation3], %s293_s20, %s293_s20, %s294_s21  }
   0x7   :  { %s295_s22 = smov [#allocation5]  }
   0x8   :  { %s40_s23 = sshll.u32 %s295_s22, 4  ;;  %s41_s23 = int_to_ptr.vmem [resolvable:$true] %s40_s23 }
   0x9   :  { %46 = dma.hbm_to_vmem [thread:$0]  %s39_s19, 512, %s41_s23, [#allocation6], %s293_s20, %s293_s20, %s294_s21  }
   0xa   :  { %284 = dma.done.wait [#allocation3], 512  }
   0xb   :  { %285 = vsyncadd [#allocation3], 4294966784 }
   0xc   :  { %286 = dma.done.wait [#allocation6], 512  }
   0xd   :  { %287 = vsyncadd [#allocation6], 4294966784  ;;  %v71_v0 = vld [vmem:[#allocation2] sm:$0xff]  ;;  %v72_v1 = vld [vmem:[#allocation2 + $0x8] sm:$0xff]  ;;  %s296_s0 = smov [#allocation7]   ;;  %s141_s26 = sshll.u32 %s344_s2, 4  ;;  %s142_s26 = int_to_ptr.hbm [resolvable:$true] %s141_s26 }
   0xe   :  { %v79_v2 = vmul.f32 0.5, %v71_v0  ;;  %v80_v3 = vmul.f32 0.5, %v72_v1  ;;  %v73_v4 = vld [vmem:[#allocation2 + $0x10] sm:$0xff]  ;;  %v74_v6 = vld [vmem:[#allocation2 + $0x18] sm:$0xff]  ;;  %v75_v12 = vld [vmem:[#allocation5] sm:$0xff]  ;;  %s139_s1 = sshll.u32 %s296_s0, 4  ;;  %s140_s1 = int_to_ptr.vmem [resolvable:$true] %s139_s1 }
   0xf   :  { %v81_v5 = vmul.f32 0.5, %v73_v4  ;;  %v82_v7 = vmul.f32 0.5, %v74_v6  ;;  %v76_v16 = vld [vmem:[#allocation5 + $0x8] sm:$0xff]  ;;  %v77_v19 = vld [vmem:[#allocation5 + $0x10] sm:$0xff]  ;;  %v78_v23 = vld [vmem:[#allocation5 + $0x18] sm:$0xff]  ;;  %s297_s27 = smov [#allocation8]  }
  0x10   :  { %180 = vtanh.f32 %v79_v2  ;;  %s152_s28 = sshll.u32 %s297_s27, 4  ;;  %s154_s4 = sshll.u32 %s345_s3, 4  ;;  %s153_s28 = int_to_ptr.vmem [resolvable:$true] %s152_s28  ;;  %s155_s4 = int_to_ptr.hbm [resolvable:$true] %s154_s4 }
  0x11   :  { %182 = vtanh.f32 %v80_v3 }
  0x12   :  { %184 = vtanh.f32 %v81_v5 }
  0x13   :  { %186 = vtanh.f32 %v82_v7 }
  0x16   :  { %v181_v8 = vpop.eup %180 }
  0x17   :  { %v183_v9 = vpop.eup %182  ;;  %v87_v10 = vadd.f32 1.0, %v181_v8 }
  0x18   :  { %v185_v11 = vpop.eup %184  ;;  %v88_v13 = vadd.f32 1.0, %v183_v9 }
  0x19   :  { %v187_v14 = vpop.eup %186  ;;  %v91_v15 = vmul.f32 0.5, %v87_v10  ;;  %v89_v17 = vadd.f32 1.0, %v185_v11 }
  0x1a   :  { %v92_v18 = vmul.f32 0.5, %v88_v13  ;;  %v90_v20 = vadd.f32 1.0, %v187_v14 }
  0x1b   :  { %v99_v21 = vmul.f32 %v91_v15, %v75_v12  ;;  %v93_v22 = vmul.f32 0.5, %v89_v17  ;;  %v119_v24 = vadd.f32 %v91_v15, %v75_v12 }
  0x1c   :  { %v100_v25 = vmul.f32 %v92_v18, %v76_v16  ;;  %v94_v26 = vmul.f32 0.5, %v90_v20  ;;  %v120_v27 = vadd.f32 %v92_v18, %v76_v16 }
  0x1d   :  { %v101_v28 = vmul.f32 %v93_v22, %v77_v19  ;;  %v121_v29 = vadd.f32 %v93_v22, %v77_v19  ;;  %111 = vst [vmem:[#allocation7] sm:$0xff] %v99_v21 }
  0x1e   :  { %v102_v30 = vmul.f32 %v94_v26, %v78_v23  ;;  %v122_v31 = vadd.f32 %v94_v26, %v78_v23  ;;  %112 = vst [vmem:[#allocation7 + $0x8] sm:$0xff] %v100_v25 }
  0x1f   :  { %113 = vst [vmem:[#allocation7 + $0x10] sm:$0xff] %v101_v28 }
  0x20   :  { %114 = vst [vmem:[#allocation7 + $0x18] sm:$0xff] %v102_v30 }
  0x21   :  { %131 = vst [vmem:[#allocation8] sm:$0xff] %v119_v24  ;;  %147 = dma.vmem_to_hbm [thread:$0]  %s140_s1, 512, %s142_s26, [#allocation4], %s293_s20, %s293_s20, %s294_s21  }
  0x22   :  { %132 = vst [vmem:[#allocation8 + $0x8] sm:$0xff] %v120_v27 }
  0x23   :  { %133 = vst [vmem:[#allocation8 + $0x10] sm:$0xff] %v121_v29 }
  0x24   :  { %134 = vst [vmem:[#allocation8 + $0x18] sm:$0xff] %v122_v31 }
  0x25   :  { %160 = dma.vmem_to_hbm [thread:$0]  %s153_s28, 512, %s155_s4, [#allocation9], %s293_s20, %s293_s20, %s294_s21  }
  0x26   :  { %288 = dma.done.wait [#allocation4], 512  }
  0x27   :  { %289 = vsyncadd [#allocation4], 4294966784 }
  0x28   :  { %290 = dma.done.wait [#allocation9], 512  }
  0x29   :  { %291 = vsyncadd [#allocation9], 4294966784 }
  0x2a   :  { %169 = vsyncpa [#allocation3], 1 }
  0x2b   :  { %170 = vsyncpa [#allocation6], 1 }
  0x2c   :  { %171 = vsyncpa [#allocation4], 1 }
  0x2d   :  { %172 = vsyncpa [#allocation9], 1 }

</bundles_post_ra>
